<compile_context>
chip_gen: v5e
topology: v5e:2x2
jax: 0.10.0
libtpu: 0.0.40
codegen_flags: <defaults>
</compile_context>

<pallas_src>
import functools
import math

import jax
import jax.numpy as jnp
from jax import lax
from jax.experimental import pallas as pl
from jax.experimental.pallas import tpu as pltpu


# ----------------------------------------------------------------------------
# Hardware queries (defensive: fall back to conservative v7x-safe defaults).
# ----------------------------------------------------------------------------
def _vmem_limit_bytes():
    cap = 0
    try:
        info = pltpu.get_tpu_info()
        cap = int(getattr(info, "vmem_capacity_bytes", 0) or 0)
    except Exception:
        cap = 0
    if cap <= 0:
        cap = 64 * 1024 * 1024          # conservative (v7x-sized) fallback
    # Half of physical VMEM as the scoped limit: 32 MiB on v7x, 64 MiB on
    # v5e/v6e (128 MiB physical).
    return max(32 * 1024 * 1024, min(cap // 2, 64 * 1024 * 1024))


def _detect_tensorcores():
    try:
        info = pltpu.get_tpu_info()
    except Exception:
        return 1
    for name in ("num_cores", "core_count", "num_tensorcores", "tensorcore_count"):
        v = getattr(info, name, None)
        if isinstance(v, int) and 1 <= v <= 8:
            return v
    return 1


# ----------------------------------------------------------------------------
# Kernel
# ----------------------------------------------------------------------------
def _sce_kernel(logits_ref, targets_ref, out_ref, *, alpha, beta, smoothing,
                n_rows, row_tile, tiles_per_core, two_axis):
    if two_axis:
        step = pl.program_id(1)
        tile_idx = pl.program_id(0) * tiles_per_core + step   # un-clamped logical tile
    else:
        step = pl.program_id(0)
        tile_idx = step

    x = logits_ref[...].astype(jnp.float32)      # (TN, C); f32 math in-kernel
    t = targets_ref[...]                          # (TN, 1) int32
    tn, c = x.shape

    # ---- numerically stable softmax statistics (per row) -------------------
    m = jnp.max(x, axis=1, keepdims=True)         # (TN, 1)
    shifted = x - m
    ex = jnp.exp(shifted)                         # only full-width transcendental
    denom = jnp.sum(ex, axis=1, keepdims=True)    # (TN, 1)
    log_z = jnp.log(denom)                        # (TN, 1)

    # ---- target statistics from one masked cross-lane reduction ------------
    col = lax.broadcasted_iota(jnp.int32, (tn, c), 1)
    shifted_tgt = jnp.sum(jnp.where(col == t, shifted, 0.0), axis=1, keepdims=True)
    logp_tgt = shifted_tgt - log_z                # log_softmax at target
    # p[target] = exp(log_softmax[target]): EUP exp on (TN,1), no divide,
    # full f32 accuracy (an approx reciprocal would fail the tolerance since
    # RCE multiplies this by ~|log 1e-7| = 16).
    p_tgt = jnp.exp(logp_tgt)

    # ---- CE / RCE per row (algebraically reduced; trace-time specialized) --
    if smoothing > 0.0:
        off = smoothing / (c - 1) if c > 1 else 0.0
        conf = 1.0 - smoothing
        sum_logp = jnp.sum(shifted, axis=1, keepdims=True) - float(c) * log_z
        ce_row = -(off * sum_logp + (conf - off) * logp_tgt)
    else:
        off, conf = 0.0, 1.0
        ce_row = -logp_tgt                        # == F.cross_entropy per row
    log_off = math.log(off + 1e-7)                # Python-time constants
    log_conf = math.log(conf + 1e-7)
    # sum_c(probs) == 1, so the off-target part of RCE collapses to a constant.
    rce_row = -(log_off + (log_conf - log_off) * p_tgt)

    # ---- mask rows past the true batch size (ragged / clamped tiles) -------
    base = tile_idx * row_tile
    row = base + lax.broadcasted_iota(jnp.int32, (tn, 1), 0)
    valid = row < n_rows
    contrib = jnp.where(valid, alpha * ce_row + beta * rce_row, 0.0)
    partial = jnp.sum(contrib)

    # ---- accumulate this core's partial sum in its (1,1) SMEM output block -
    @pl.when(step == 0)
    def _():
        out_ref[0, 0] = jnp.float32(0.0)

    out_ref[0, 0] += partial


# ----------------------------------------------------------------------------
# Row-tile sizing: lane-padded, f32-aware VMEM accounting; no row cap.
# ----------------------------------------------------------------------------
def _choose_row_tile(n, c, itemsize, vmem_limit, row_tile=None):
    align = 8 if itemsize >= 4 else 16            # sublane packing for 16-bit dtypes

    if row_tile is not None:
        tn = max(align, (int(row_tile) // align) * align)
        return n if tn >= n else tn

    # Real VMEM footprint, not raw HBM bytes:
    #   - input block pads its last dim to 128 lanes (double-buffered),
    #   - the (TN,1) int32 targets block also pads to 128 lanes (double-buffered),
    #   - in-kernel f32 intermediates (~x, shifted, ex) at padded width.
    # NOTE: for very small C, folding k=128//C rows per lane-row in the wrapper
    # would recover the 128/C wasted lanes; not done here (kept simple).
    c_pad = -(-c // 128) * 128
    in_row = c_pad * itemsize                     # one input pipeline buffer / row
    tgt_row = 128 * 4                             # one targets buffer / row (padded)
    work_row = 3 * c_pad * 4                      # f32 working copies / row
    bytes_per_row = 2 * (in_row + tgt_row) + work_row

    budget = int(0.7 * vmem_limit)                # headroom for iota/mask/compiler scratch
    tn = budget // max(1, bytes_per_row)
    tn = max(align, (tn // align) * align)
    return n if tn >= n else tn


# ----------------------------------------------------------------------------
# Wrapper
# ----------------------------------------------------------------------------
def sce_loss(logits, targets, *, alpha=1.0, beta=1.0, label_smoothing=0.0,
             row_tile=None, core_split=None):
    """Pallas TPU implementation of SCELoss.forward (scalar loss)."""
    n, c = logits.shape
    targets2d = targets.astype(jnp.int32).reshape(n, 1)
    itemsize = jnp.dtype(logits.dtype).itemsize

    vmem_limit = _vmem_limit_bytes()
    tn = _choose_row_tile(n, c, itemsize, vmem_limit, row_tile)
    num_tiles = pl.cdiv(n, tn)

    detected_cores = _detect_tensorcores()
    if core_split is None:
        core_split = detected_cores if num_tiles >= detected_cores else 1
    core_split = max(1, min(int(core_split), num_tiles))
    two_axis = core_split > 1

    if two_axis:
        tiles_per_core = pl.cdiv(num_tiles, core_split)
        last_block = num_tiles - 1

        # Clamp so a fully out-of-range step (odd tile count) re-reads the last
        # valid tile instead of an OOB DMA; those rows are masked in-kernel.
        def block_map(core_idx, i):
            return (jnp.minimum(core_idx * tiles_per_core + i, last_block), 0)

        grid = (core_split, tiles_per_core)
        out_map = lambda core_idx, i: (core_idx, 0)
        # Only CORE_PARALLEL provably shards the outer axis across TensorCores
        # (v7x); on single-core chips fall back to the harmless "parallel".
        outer_sem = (pltpu.CORE_PARALLEL if detected_cores >= core_split
                     else "parallel")
        dim_sem = (outer_sem, "arbitrary")
    else:
        tiles_per_core = num_tiles
        block_map = lambda i: (i, 0)
        grid = (num_tiles,)
        out_map = lambda i: (0, 0)
        dim_sem = ("arbitrary",)

    kernel = functools.partial(
        _sce_kernel,
        alpha=float(alpha),
        beta=float(beta),
        smoothing=float(label_smoothing),
        n_rows=n,
        row_tile=tn,
        tiles_per_core=tiles_per_core,
        two_axis=two_axis,
    )

    partials = pl.pallas_call(
        kernel,
        out_shape=jax.ShapeDtypeStruct((core_split, 1), jnp.float32),
        grid_spec=pltpu.PrefetchScalarGridSpec(
            num_scalar_prefetch=0,
            grid=grid,
            in_specs=[
                pl.BlockSpec((tn, c), block_map),   # logits tile, native dtype
                pl.BlockSpec((tn, 1), block_map),   # matching targets tile
            ],
            out_specs=pl.BlockSpec((1, 1), out_map, memory_space=pltpu.SMEM),
        ),
        compiler_params=pltpu.CompilerParams(
            dimension_semantics=dim_sem,
            vmem_limit_bytes=vmem_limit,
        ),
    )(logits, targets2d)

    # Combine per-core partial sums -> mean over the true batch size.
    return jnp.sum(partials) / n


# ----------------------------------------------------------------------------
# Pure-JAX reference mirroring the PyTorch module.
# ----------------------------------------------------------------------------
def _sce_loss_ref(logits, targets, *, alpha=1.0, beta=1.0, label_smoothing=0.0):
    n, c = logits.shape
    x = logits.astype(jnp.float32)
    log_probs = jax.nn.log_softmax(x, axis=1)
    probs = jax.nn.softmax(x, axis=1)
    one_hot = jax.nn.one_hot(targets, c, dtype=jnp.float32)
    if label_smoothing > 0:
        off = label_smoothing / (c - 1)
        conf = 1.0 - label_smoothing
        smooth_t = off + (conf - off) * one_hot
    else:
        smooth_t = one_hot
    ce = jnp.mean(jnp.sum(-smooth_t * log_probs, axis=1))
    rce = jnp.mean(jnp.sum(-probs * jnp.log(smooth_t + 1e-7), axis=1))
    return alpha * ce + beta * rce


if __name__ == "__main__":
    key = jax.random.PRNGKey(0)
    k1, k2, k3, k4 = jax.random.split(key, 4)

    # Case 1: small single-tile batch, no label smoothing (cross_entropy branch).
    batch, n_classes = 8, 32
    logits = jax.random.normal(k1, (batch, n_classes), dtype=jnp.float32)
    targets = jax.random.randint(k2, (batch,), 0, n_classes, dtype=jnp.int32)
    out0 = jax.block_until_ready(sce_loss(logits, targets))
    ref0 = _sce_loss_ref(logits, targets)
    assert jnp.allclose(out0, ref0, rtol=1e-5, atol=5e-5), (out0, ref0)

    # Case 2: label-smoothing branch with non-trivial alpha / beta.
    out1 = jax.block_until_ready(
        sce_loss(logits, targets, alpha=0.5, beta=2.0, label_smoothing=0.1))
    ref1 = _sce_loss_ref(logits, targets, alpha=0.5, beta=2.0, label_smoothing=0.1)
    assert jnp.allclose(out1, ref1, rtol=1e-5, atol=5e-5), (out1, ref1)

    # Case 3: multi-tile accumulation + ragged last tile + explicit 2-way core
    # split (odd tile count exercises the clamped, fully-masked extra step).
    batch2, n_classes2 = 50, 32
    logits2 = jax.random.normal(k3, (batch2, n_classes2), dtype=jnp.float32)
    targets2 = jax.random.randint(k4, (batch2,), 0, n_classes2, dtype=jnp.int32)
    out2 = jax.block_until_ready(
        sce_loss(logits2, targets2, alpha=1.0, beta=1.0, label_smoothing=0.05,
                 row_tile=8, core_split=2))
    ref2 = _sce_loss_ref(logits2, targets2, alpha=1.0, beta=1.0,
                         label_smoothing=0.05)
    assert jnp.allclose(out2, ref2, rtol=1e-5, atol=5e-5), (out2, ref2)

    # Case 4: native bf16 logits through the BlockSpec (f32 math in-kernel),
    # auto tile sizing (single full-array block here).
    logits_bf16 = logits2.astype(jnp.bfloat16)
    out3 = jax.block_until_ready(sce_loss(logits_bf16, targets2))
    ref3 = _sce_loss_ref(logits_bf16, targets2)
    assert jnp.allclose(out3, ref3, rtol=1e-5, atol=1e-4), (out3, ref3)

    print("KERNEL_OK")
</pallas_src>

<mosaic_0001>
module attributes {stable_mosaic.version = 11 : i64} {
  func.func @_sce_kernel(%arg0: i32, %arg1: memref<8x32xf32, #tpu.memory_space<vmem>>, %arg2: memref<8x1xi32, #tpu.memory_space<vmem>>, %arg3: memref<1x1xf32, #tpu.memory_space<smem>>) attributes {dimension_semantics = [#tpu.dimension_semantics<arbitrary>], iteration_bounds = array<i64: 1>, scalar_prefetch = 0 : i64, scratch_operands = 0 : i64, tpu.core_type = #tpu.core_type<tc>, window_params = [{transform_indices = @transform_0, window_bounds = array<i64: 8, 32>}, {transform_indices = @transform_1, window_bounds = array<i64: 8, 1>}, {transform_indices = @transform_2, window_bounds = array<i64: 1, 1>}]} {
    %c0 = arith.constant 0 : index
    %c0_0 = arith.constant 0 : index
    %0 = vector.load %arg1[%c0, %c0_0] : memref<8x32xf32, #tpu.memory_space<vmem>>, vector<8x32xf32>
    %c0_1 = arith.constant 0 : index
    %c0_2 = arith.constant 0 : index
    %1 = vector.load %arg2[%c0_1, %c0_2] : memref<8x1xi32, #tpu.memory_space<vmem>>, vector<8x1xi32>
    %cst = arith.constant dense<0xFF800000> : vector<8xf32>
    %2 = vector.multi_reduction <maximumf>, %0, %cst [1] : vector<8x32xf32> to vector<8xf32>
    %3 = vector.shape_cast %2 : vector<8xf32> to vector<8x1xf32>
    %4 = vector.broadcast %3 : vector<8x1xf32> to vector<8x32xf32>
    %5 = arith.subf %0, %4 : vector<8x32xf32>
    %6 = math.exp %5 : vector<8x32xf32>
    %cst_3 = arith.constant dense<0.000000e+00> : vector<8xf32>
    %7 = vector.multi_reduction <add>, %6, %cst_3 [1] : vector<8x32xf32> to vector<8xf32>
    %8 = vector.shape_cast %7 : vector<8xf32> to vector<8x1xf32>
    %9 = math.log %8 : vector<8x1xf32>
    %10 = tpu.iota {dimensions = array<i32: 1>} : vector<8x32xi32>
    %11 = vector.broadcast %1 : vector<8x1xi32> to vector<8x32xi32>
    %12 = arith.cmpi eq, %10, %11 : vector<8x32xi32>
    %cst_4 = arith.constant 0.000000e+00 : f32
    %13 = vector.broadcast %cst_4 : f32 to vector<8x32xf32>
    %14 = arith.select %12, %5, %13 : vector<8x32xi1>, vector<8x32xf32>
    %cst_5 = arith.constant dense<0.000000e+00> : vector<8xf32>
    %15 = vector.multi_reduction <add>, %14, %cst_5 [1] : vector<8x32xf32> to vector<8xf32>
    %16 = vector.shape_cast %15 : vector<8xf32> to vector<8x1xf32>
    %17 = arith.subf %16, %9 : vector<8x1xf32>
    %18 = math.exp %17 : vector<8x1xf32>
    %cst_6 = arith.constant 0.000000e+00 : f32
    %19 = vector.broadcast %cst_6 : f32 to vector<8x1xf32>
    %20 = arith.subf %19, %17 : vector<8x1xf32>
    %cst_7 = arith.constant 16.1180954 : f32
    %21 = vector.broadcast %cst_7 : f32 to vector<8x1xf32>
    %22 = arith.mulf %21, %18 : vector<8x1xf32>
    %cst_8 = arith.constant -16.1180954 : f32
    %23 = vector.broadcast %cst_8 : f32 to vector<8x1xf32>
    %24 = arith.addf %23, %22 : vector<8x1xf32>
    %cst_9 = arith.constant 0.000000e+00 : f32
    %25 = vector.broadcast %cst_9 : f32 to vector<8x1xf32>
    %26 = arith.subf %25, %24 : vector<8x1xf32>
    %c8_i32 = arith.constant 8 : i32
    %27 = arith.muli %arg0, %c8_i32 : i32
    %28 = tpu.iota {dimensions = array<i32: 0>} : vector<8x1xi32>
    %29 = vector.broadcast %27 : i32 to vector<8x1xi32>
    %30 = arith.addi %29, %28 : vector<8x1xi32>
    %c8_i32_10 = arith.constant 8 : i32
    %31 = vector.broadcast %c8_i32_10 : i32 to vector<8x1xi32>
    %32 = arith.cmpi slt, %30, %31 : vector<8x1xi32>
    %cst_11 = arith.constant 1.000000e+00 : f32
    %33 = vector.broadcast %cst_11 : f32 to vector<8x1xf32>
    %34 = arith.mulf %33, %20 : vector<8x1xf32>
    %cst_12 = arith.constant 1.000000e+00 : f32
    %35 = vector.broadcast %cst_12 : f32 to vector<8x1xf32>
    %36 = arith.mulf %35, %26 : vector<8x1xf32>
    %37 = arith.addf %34, %36 : vector<8x1xf32>
    %cst_13 = arith.constant 0.000000e+00 : f32
    %38 = vector.broadcast %cst_13 : f32 to vector<8x1xf32>
    %39 = arith.select %32, %37, %38 : vector<8x1xi1>, vector<8x1xf32>
    %40 = vector.shape_cast %39 : vector<8x1xf32> to vector<1x8x1xf32>
    %cst_14 = arith.constant dense<0.000000e+00> : vector<1xf32>
    %41 = vector.multi_reduction <add>, %40, %cst_14 [1, 2] : vector<1x8x1xf32> to vector<1xf32>
    %42 = vector.shape_cast %41 : vector<1xf32> to vector<1x1x1xf32>
    %43 = vector.extract %42[0, 0, 0] : f32 from vector<1x1x1xf32>
    %c0_i32 = arith.constant 0 : i32
    %44 = arith.cmpi eq, %arg0, %c0_i32 : i32
    %45 = arith.extui %44 : i1 to i32
    %c0_i32_15 = arith.constant 0 : i32
    %46 = arith.cmpi ne, %45, %c0_i32_15 : i32
    scf.if %46 {
      %cst_20 = arith.constant 0.000000e+00 : f32
      %c0_21 = arith.constant 0 : index
      %c0_22 = arith.constant 0 : index
      %50 = memref.load %arg3[%c0_21, %c0_22] : memref<1x1xf32, #tpu.memory_space<smem>>
      memref.store %cst_20, %arg3[%c0_21, %c0_22] : memref<1x1xf32, #tpu.memory_space<smem>>
    } else {
    }
    %c0_16 = arith.constant 0 : index
    %c0_17 = arith.constant 0 : index
    %47 = memref.load %arg3[%c0_16, %c0_17] : memref<1x1xf32, #tpu.memory_space<smem>>
    %48 = arith.addf %47, %43 : f32
    %c0_18 = arith.constant 0 : index
    %c0_19 = arith.constant 0 : index
    %49 = memref.load %arg3[%c0_18, %c0_19] : memref<1x1xf32, #tpu.memory_space<smem>>
    memref.store %48, %arg3[%c0_18, %c0_19] : memref<1x1xf32, #tpu.memory_space<smem>>
    return
  }
  func.func @transform_0(%arg0: i32) -> (i32, i32) {
    %c0_i32 = arith.constant 0 : i32
    %c0_i32_0 = arith.constant 0 : i32
    return %arg0, %c0_i32 : i32, i32
  }
  func.func @transform_1(%arg0: i32) -> (i32, i32) {
    %c0_i32 = arith.constant 0 : i32
    %c0_i32_0 = arith.constant 0 : i32
    return %arg0, %c0_i32 : i32, i32
  }
  func.func @transform_2(%arg0: i32) -> (i32, i32) {
    %c0_i32 = arith.constant 0 : i32
    %c0_i32_0 = arith.constant 0 : i32
    %c0_i32_1 = arith.constant 0 : i32
    return %c0_i32, %c0_i32_0 : i32, i32
  }
}

</mosaic_0001>

<bundles_post_ra>
// kernel: tpu_custom_call.1
= control target key start
LH: loop header
LB: loop body
LE: loop exit
PB: predicated region body
PF: predicated region fallthrough
CT: control target
= control target key end

     0   :  { %vm14_vm0 = vcmask 261120   ;;  %s142_s0 = inlined_call_operand.vmem [shape: f32[8,32], index: 0, kind: input, shape index: {}]   ;;  %s143_s1 = inlined_call_operand.vmem [shape: s32[8,1], index: 1, kind: input, shape index: {}]   ;;  %s144_s2 = inlined_call_operand.hbm [shape: f32[1,1], index: 2, kind: output, shape index: {}]  }
   0x1   :  { %v12_v0 = vld [vmem:[%s142_s0] sm:$0xff] }
   0x2   :  { %7 = vsyncpa [#allocation3], 0  ;;  %v15_v1 = vsel %vm14_vm0, %v12_v0, -inf  ;;  %v113_v2 = vmov 0   ;;  %v13_v3 = vld [vmem:[%s143_s1] sm:$0xff]  ;;  %v26_v9 = vlaneseq  ;;  %vm51_vm2 = vcmask 7168  }
   0x3   :  { %92 = vset.pattern.permute.xlu0 %v113_v2  ;;  %s77_s13 = sshll.u32 %s144_s2, 4  ;;  %s114_s15 = smov [#allocation2]   ;;  %s78_s13 = int_to_ptr.hbm [resolvable:$true] %s77_s13 }
   0x4   :  { %16 = vmax.xlane.f32.xlu0 %v15_v1  ;;  %v27_v10 = vand.u32 127, %v26_v9 }
  0x18   :  { %29 = vperm.xlu0 %92, %v13_v3  }
  0x77   :  { %v17_v4 = vpop.xlane.xlu0 %16 }
  0x78   :  { %v18_v5 = vsub.f32 %v12_v0, %v17_v4 }
  0x7a   :  { %v19_v6 = vmul.f32 1.442695, %v18_v5 }
  0x7c   :  { %93 = vpow2.f32 %v19_v6 }
  0x82   :  { %v94_v7 = vpop.eup %93 }
  0x83   :  { %v21_v8 = vsel %vm14_vm0, %v94_v7, 0.0 }
  0x84   :  { %22 = vadd.xlane.f32.xlu1 %v21_v8 }
  0x8a   :  { %v30_v11 = vpop.permute.xlu0 %29 }
  0x8b   :  { %vm31_vm1 = vcmp.eq.s32.totalorder %v27_v10, %v30_v11 }
  0x8c   :  { %v32_v12 = vsel %vm31_vm1, %v18_v5, 0.0 }
  0x8d   :  { %v33_v13 = vsel %vm14_vm0, %v32_v12, 0.0 }
  0x8e   :  { %34 = vadd.xlane.f32.xlu1 %v33_v13 }
  0xf7   :  { %v23_v14 = vpop.xlane.xlu1 %22 }
  0xf8   :  { %95 = vlog2.f32 %v23_v14 }
  0xfe   :  { %v96_v15 = vpop.eup %95 }
  0xff   :  { %v25_v16 = vmul.f32 0.6931472, %v96_v15 }
 0x101   :  { %v35_v17 = vpop.xlane.xlu1 %34 }
 0x102   :  { %v36_v18 = vsub.f32 %v35_v17, %v25_v16 }
 0x104   :  { %v37_v19 = vmul.f32 1.442695, %v36_v18  ;;  %v39_v23 = vsub.f32 0.0, %v36_v18 }
 0x106   :  { %97 = vpow2.f32 %v37_v19 }
 0x10c   :  { %v98_v20 = vpop.eup %97 }
 0x10d   :  { %v40_v21 = vmul.f32 16.118095, %v98_v20 }
 0x10f   :  { %v41_v22 = vadd.f32 -16.118095, %v40_v21 }
 0x111   :  { %v42_v24 = vsub.f32 0.0, %v41_v22 }
 0x113   :  { %v49_v25 = vadd.f32 %v42_v24, %v39_v23 }
 0x115   :  { %v52_v26 = vsel %vm51_vm2, %v49_v25, 0.0 }
 0x116   :  { %53 = vadd.xlane.f32.xlu2 %v52_v26 }
 0x189   :  { %v54_v27 = vpop.xlane.xlu2 %53 }
 0x18a   :  { %v55_v28 = vrot.slane %v54_v27, 4 }
 0x18c   :  { %v56_v29 = vadd.f32 %v55_v28, %v54_v27 }
 0x18e   :  { %v57_v30 = vrot.slane %v56_v29, 2 }
 0x190   :  { %v58_v31 = vadd.f32 %v57_v30, %v56_v29 }
 0x192   :  { %v59_v32 = vrot.slane %v58_v31, 1 }
 0x194   :  { %v60_v33 = vadd.f32 %v59_v32, %v58_v31 }
 0x196   :  { %87 = vpush %v60_v33 }
 0x1c7   :  { %s88_s14 = spop %87 }
 0x1c8   :  { %71 = sst [smem:[#allocation2]] %s88_s14 }
 0x1c9   :  { %80 = dma.smem_to_hbm %s114_s15, 16, %s78_s13, [#allocation3]  }
 0x1ca   :  { %111 = dma.done.wait [#allocation3], 16  }
 0x1cb   :  { %112 = vsyncadd [#allocation3], 4294967280 }
 0x1cc   :  { %85 = sfence }
 0x1cd   :  { %86 = vsyncpa [#allocation3], 1 }

</bundles_post_ra>
